<compile_context>
chip_gen: v6e
topology: v6e:2x2x1
jax: 0.10.0
libtpu: 0.0.40
codegen_flags: <defaults>
</compile_context>

<pallas_src>
import jax
import jax.numpy as jnp
from jax.experimental import pallas as pl
from jax.experimental.pallas import tpu as pltpu

HIDDEN = 32                 # hidden_size
OUTPUT = 64                 # output_size (vocab)
MAXLEN = 8                  # max_length (attention span)
GATES = 3 * HIDDEN          # 96 (r|z|n)
FUSED = MAXLEN + GATES      # 104 lanes: [attn_logits | gh]
SLAB = 128                  # lane-dense output width


def attn_decoder_kernel(tok_ref, emb_ref, hid_ref, enc_ref, w1e_ref, w1h_ref,
                        comb_ref, wih_ref, outw_ref, bias_ref, out_ref):
    del tok_ref                                # consumed by the index_map gather
    f32 = jnp.float32
    H, L, V = HIDDEN, MAXLEN, OUTPUT

    emb = emb_ref[0]                           # [1, H] embedding row (gathered by DMA)
    hid = hid_ref[...]                         # [1, H]

    # One wide MXU pass: [attn_logits | gh] = emb @ W1e + hid @ W1h + [attn_b | b_hh].
    # gh = hid @ W_hh.T + b_hh does not depend on attention, so it rides for
    # free in the lane dimension. Split weights avoid an in-kernel lane concat.
    b0 = bias_ref[0:1, :]
    fused = (jnp.dot(emb, w1e_ref[...], preferred_element_type=f32)
             + jnp.dot(hid, w1h_ref[...], preferred_element_type=f32)
             + b0[:, :FUSED])
    attn_logits = fused[:, :L]                 # [1, L]
    gh = fused[:, L:]                          # [1, 3H]  (b_hh already added)

    # attn_weights = softmax(attn_logits)
    m = jnp.max(attn_logits, axis=1, keepdims=True)
    e = jnp.exp(attn_logits - m)
    attn_w = e / jnp.sum(e, axis=1, keepdims=True)           # [1, L]

    # attn_applied = attn_weights @ encoder_outputs
    applied = jnp.dot(attn_w, enc_ref[...], preferred_element_type=f32)  # [1, H]

    # output = relu(attn_combine(cat(embedded, attn_applied)))  (split-weight form)
    b1 = bias_ref[1:2, :]
    x = (jnp.dot(emb, comb_ref[:H, :], preferred_element_type=f32)
         + jnp.dot(applied, comb_ref[H:, :], preferred_element_type=f32)
         + b1[:, :H])
    x = jnp.maximum(x, 0.0)                                   # [1, H]

    # Single-step GRU (PyTorch gate order r, z, n), packed weights:
    # gi = x @ W_ih.T + b_ih in one wide matmul, gates via static lane slices.
    b2 = bias_ref[2:3, :]
    gi = jnp.dot(x, wih_ref[...], preferred_element_type=f32) + b2[:, :GATES]
    r = jax.nn.sigmoid(gi[:, :H] + gh[:, :H])
    z = jax.nn.sigmoid(gi[:, H:2 * H] + gh[:, H:2 * H])
    n = jnp.tanh(gi[:, 2 * H:] + r * gh[:, 2 * H:])
    new_h = (1.0 - z) * n + z * hid                           # [1, H]

    # output = log_softmax(out(new_h))
    b3 = bias_ref[3:4, :]
    logits = jnp.dot(new_h, outw_ref[...], preferred_element_type=f32) + b3[:, :V]
    lm = jnp.max(logits, axis=1, keepdims=True)
    shifted = logits - lm
    lse = jnp.log(jnp.sum(jnp.exp(shifted), axis=1, keepdims=True))
    logp = shifted - lse                                      # [1, V]

    # Single lane-dense 128-wide store: [logp | new_h | attn_w | 0-pad]
    pad = jnp.zeros((1, SLAB - (V + H + L)), f32)
    out_ref[...] = jnp.concatenate([logp, new_h, attn_w, pad], axis=1)


def init_params(key):
    """PyTorch-layout parameters (nn.Linear / nn.GRU conventions)."""
    ks = jax.random.split(key, 11)

    def unif(k, shape, fan_in):
        bound = 1.0 / float(fan_in) ** 0.5
        return jax.random.uniform(k, shape, jnp.float32, -bound, bound)

    return dict(
        embedding=jax.random.normal(ks[0], (OUTPUT, HIDDEN), jnp.float32),
        attn_w=unif(ks[1], (MAXLEN, 2 * HIDDEN), 2 * HIDDEN),     # [out, in]
        attn_b=unif(ks[2], (MAXLEN,), 2 * HIDDEN),
        comb_w=unif(ks[3], (HIDDEN, 2 * HIDDEN), 2 * HIDDEN),
        comb_b=unif(ks[4], (HIDDEN,), 2 * HIDDEN),
        gru_wih=unif(ks[5], (3 * HIDDEN, HIDDEN), HIDDEN),        # [W_ir; W_iz; W_in]
        gru_whh=unif(ks[6], (3 * HIDDEN, HIDDEN), HIDDEN),        # [W_hr; W_hz; W_hn]
        gru_bih=unif(ks[7], (3 * HIDDEN,), HIDDEN),
        gru_bhh=unif(ks[8], (3 * HIDDEN,), HIDDEN),
        out_w=unif(ks[9], (OUTPUT, HIDDEN), HIDDEN),
        out_b=unif(ks[10], (OUTPUT,), HIDDEN),
    )


def prepare_params(params):
    """One-time weight preprocessing (hoisted out of the per-step forward)."""
    H, L, V = HIDDEN, MAXLEN, OUTPUT
    f32 = jnp.float32

    # Split block weights for the fused pass: emb @ W1e + hid @ W1h ->
    #   cols [0:L]    = attn.weight.T   (emb rows in W1e, hidden rows in W1h)
    #   cols [L:L+3H] = gru.weight_hh.T (hidden rows only -> W1h)
    aT = params['attn_w'].T                                   # [2H, L]
    w1e = jnp.zeros((H, FUSED), f32).at[:, :L].set(aT[:H])
    w1h = (jnp.zeros((H, FUSED), f32)
           .at[:, :L].set(aT[H:])
           .at[:, L:].set(params['gru_whh'].T))

    # All biases packed into one [4, 128] slab (one DMA instead of four).
    bias = jnp.zeros((4, SLAB), f32)
    bias = bias.at[0, :L].set(params['attn_b'])          # attn bias
    bias = bias.at[0, L:FUSED].set(params['gru_bhh'])    # b_hh (r|z|n)
    bias = bias.at[1, :H].set(params['comb_b'])          # attn_combine bias
    bias = bias.at[2, :GATES].set(params['gru_bih'])     # b_ih (r|z|n)
    bias = bias.at[3, :V].set(params['out_b'])           # out bias

    return dict(
        # [V, 1, H] so the gathered block's last-two dims equal the full dims.
        emb3=params['embedding'].reshape(V, 1, H),
        w1e=w1e,                             # [H, L+3H]  (embedded rows)
        w1h=w1h,                             # [H, L+3H]  (hidden rows)
        comb_wT=params['comb_w'].T,          # [2H, H] (top=emb rows, bot=applied)
        wihT=params['gru_wih'].T,            # [H, 3H]
        outT=params['out_w'].T,              # [H, V]
        bias=bias,                           # [4, 128]
    )


@jax.jit
def attn_decoder_forward(prep, token, hidden, encoder_outputs):
    """token: int32 scalar, hidden: [1,1,H], encoder_outputs: [MAXLEN, H]."""
    H, L, V = HIDDEN, MAXLEN, OUTPUT
    # TODO(synk): nn.Dropout(p=0.1) is identity here (eval-mode semantics).
    tok = jnp.asarray(token, jnp.int32).reshape(1)            # scalar-prefetch arg
    hid = hidden.reshape(1, H)

    grid_spec = pltpu.PrefetchScalarGridSpec(
        num_scalar_prefetch=1,
        grid=(1,),
        in_specs=[
            # Data-dependent gather: DMA only the embedding row for `tok`.
            pl.BlockSpec((1, 1, H), lambda i, tok: (tok[0], 0, 0)),
            pl.BlockSpec((1, H), lambda i, tok: (0, 0)),              # hidden
            pl.BlockSpec((L, H), lambda i, tok: (0, 0)),              # encoder outs
            pl.BlockSpec((H, FUSED), lambda i, tok: (0, 0)),          # w1e
            pl.BlockSpec((H, FUSED), lambda i, tok: (0, 0)),          # w1h
            pl.BlockSpec((2 * H, H), lambda i, tok: (0, 0)),          # comb_wT
            pl.BlockSpec((H, GATES), lambda i, tok: (0, 0)),          # wihT
            pl.BlockSpec((H, V), lambda i, tok: (0, 0)),              # outT
            pl.BlockSpec((4, SLAB), lambda i, tok: (0, 0)),           # bias slab
        ],
        out_specs=pl.BlockSpec((1, SLAB), lambda i, tok: (0, 0)),
    )

    out = pl.pallas_call(
        attn_decoder_kernel,
        out_shape=jax.ShapeDtypeStruct((1, SLAB), jnp.float32),
        grid_spec=grid_spec,
        compiler_params=pltpu.CompilerParams(
            dimension_semantics=("arbitrary",)),
    )(tok, prep['emb3'], hid, encoder_outputs, prep['w1e'], prep['w1h'],
      prep['comb_wT'], prep['wihT'], prep['outT'], prep['bias'])

    logp = out[:, :V]
    new_h = out[:, V:V + H]
    attn_w = out[:, V + H:V + H + L]
    return logp, new_h.reshape(1, 1, H), attn_w


def reference_forward(params, token, hidden, encoder_outputs):
    H = HIDDEN
    emb = params['embedding'][token].reshape(1, H)
    hid = hidden.reshape(1, H)
    cat1 = jnp.concatenate([emb, hid], axis=1)
    attn_w = jax.nn.softmax(cat1 @ params['attn_w'].T + params['attn_b'], axis=1)
    applied = attn_w @ encoder_outputs
    x = jnp.maximum(jnp.concatenate([emb, applied], axis=1) @ params['comb_w'].T
                    + params['comb_b'], 0.0)
    gi = x @ params['gru_wih'].T + params['gru_bih']
    gh = hid @ params['gru_whh'].T + params['gru_bhh']
    r = jax.nn.sigmoid(gi[:, :H] + gh[:, :H])
    z = jax.nn.sigmoid(gi[:, H:2 * H] + gh[:, H:2 * H])
    n = jnp.tanh(gi[:, 2 * H:] + r * gh[:, 2 * H:])
    new_h = (1.0 - z) * n + z * hid
    logp = jax.nn.log_softmax(new_h @ params['out_w'].T + params['out_b'], axis=1)
    return logp, new_h.reshape(1, 1, H), attn_w


if __name__ == "__main__":
    key = jax.random.PRNGKey(0)
    pkey, ekey, hkey = jax.random.split(key, 3)
    params = init_params(pkey)
    prep = prepare_params(params)          # one-time prep, not per step

    token = jnp.array(5, dtype=jnp.int32)
    hidden = jax.random.normal(hkey, (1, 1, HIDDEN), jnp.float32)
    encoder_outputs = jax.random.normal(ekey, (MAXLEN, HIDDEN), jnp.float32)

    logp, new_h, attn_w = attn_decoder_forward(prep, token, hidden, encoder_outputs)
    jax.block_until_ready((logp, new_h, attn_w))

    rl, rh, ra = reference_forward(params, token, hidden, encoder_outputs)
    assert jnp.allclose(logp, rl, atol=1e-4), "log-probs mismatch"
    assert jnp.allclose(new_h, rh, atol=1e-4), "hidden mismatch"
    assert jnp.allclose(attn_w, ra, atol=1e-4), "attention weights mismatch"

    print("KERNEL_OK")
</pallas_src>

<mosaic_0001>
module attributes {stable_mosaic.version = 11 : i64} {
  func.func @attn_decoder_kernel(%arg0: i32, %arg1: memref<1xi32, #tpu.memory_space<smem>>, %arg2: memref<1x1x32xf32, #tpu.memory_space<vmem>>, %arg3: memref<1x32xf32, #tpu.memory_space<vmem>>, %arg4: memref<8x32xf32, #tpu.memory_space<vmem>>, %arg5: memref<32x104xf32, #tpu.memory_space<vmem>>, %arg6: memref<32x104xf32, #tpu.memory_space<vmem>>, %arg7: memref<64x32xf32, #tpu.memory_space<vmem>>, %arg8: memref<32x96xf32, #tpu.memory_space<vmem>>, %arg9: memref<32x64xf32, #tpu.memory_space<vmem>>, %arg10: memref<4x128xf32, #tpu.memory_space<vmem>>, %arg11: memref<1x128xf32, #tpu.memory_space<vmem>>) attributes {dimension_semantics = [#tpu.dimension_semantics<arbitrary>], iteration_bounds = array<i64: 1>, scalar_prefetch = 1 : i64, scratch_operands = 0 : i64, tpu.core_type = #tpu.core_type<tc>, window_params = [{transform_indices = @transform_0, window_bounds = array<i64: 1, 1, 32>}, {pipeline_mode = #tpu.pipeline_mode<synchronous>, transform_indices = @transform_1, window_bounds = array<i64: 1, 32>}, {pipeline_mode = #tpu.pipeline_mode<synchronous>, transform_indices = @transform_2, window_bounds = array<i64: 8, 32>}, {pipeline_mode = #tpu.pipeline_mode<synchronous>, transform_indices = @transform_3, window_bounds = array<i64: 32, 104>}, {pipeline_mode = #tpu.pipeline_mode<synchronous>, transform_indices = @transform_4, window_bounds = array<i64: 32, 104>}, {pipeline_mode = #tpu.pipeline_mode<synchronous>, transform_indices = @transform_5, window_bounds = array<i64: 64, 32>}, {pipeline_mode = #tpu.pipeline_mode<synchronous>, transform_indices = @transform_6, window_bounds = array<i64: 32, 96>}, {pipeline_mode = #tpu.pipeline_mode<synchronous>, transform_indices = @transform_7, window_bounds = array<i64: 32, 64>}, {pipeline_mode = #tpu.pipeline_mode<synchronous>, transform_indices = @transform_8, window_bounds = array<i64: 4, 128>}, {pipeline_mode = #tpu.pipeline_mode<synchronous>, transform_indices = @transform_9, window_bounds = array<i64: 1, 128>}]} {
    %c0 = arith.constant 0 : index
    %c0_0 = arith.constant 0 : index
    %c0_1 = arith.constant 0 : index
    %0 = vector.load %arg2[%c0, %c0_0, %c0_1] : memref<1x1x32xf32, #tpu.memory_space<vmem>>, vector<1x1x32xf32>
    %1 = vector.shape_cast %0 : vector<1x1x32xf32> to vector<1x32xf32>
    %c0_2 = arith.constant 0 : index
    %c0_3 = arith.constant 0 : index
    %2 = vector.load %arg3[%c0_2, %c0_3] : memref<1x32xf32, #tpu.memory_space<vmem>>, vector<1x32xf32>
    %c0_4 = arith.constant 0 : index
    %c0_5 = arith.constant 0 : index
    %3 = vector.load %arg10[%c0_4, %c0_5] : memref<4x128xf32, #tpu.memory_space<vmem>>, vector<1x128xf32>
    %c0_6 = arith.constant 0 : index
    %c0_7 = arith.constant 0 : index
    %4 = vector.load %arg5[%c0_6, %c0_7] : memref<32x104xf32, #tpu.memory_space<vmem>>, vector<32x104xf32>
    %cst = arith.constant dense<0.000000e+00> : vector<1x104xf32>
    %5 = tpu.matmul %1, %4, %cst {dimension_numbers = #tpu.dot_dimension_numbers<[1], [0], [0], [1], [0, 0, 1, 1], [], []>} : vector<1x32xf32>, vector<32x104xf32>, vector<1x104xf32> -> vector<1x104xf32>
    %c0_8 = arith.constant 0 : index
    %c0_9 = arith.constant 0 : index
    %6 = vector.load %arg6[%c0_8, %c0_9] : memref<32x104xf32, #tpu.memory_space<vmem>>, vector<32x104xf32>
    %cst_10 = arith.constant dense<0.000000e+00> : vector<1x104xf32>
    %7 = tpu.matmul %2, %6, %cst_10 {dimension_numbers = #tpu.dot_dimension_numbers<[1], [0], [0], [1], [0, 0, 1, 1], [], []>} : vector<1x32xf32>, vector<32x104xf32>, vector<1x104xf32> -> vector<1x104xf32>
    %8 = arith.addf %5, %7 : vector<1x104xf32>
    %9 = vector.extract_strided_slice %3 {offsets = [0, 0], sizes = [1, 104], strides = [1, 1]} : vector<1x128xf32> to vector<1x104xf32>
    %10 = arith.addf %8, %9 : vector<1x104xf32>
    %11 = vector.extract_strided_slice %10 {offsets = [0, 0], sizes = [1, 8], strides = [1, 1]} : vector<1x104xf32> to vector<1x8xf32>
    %12 = vector.extract_strided_slice %10 {offsets = [0, 8], sizes = [1, 96], strides = [1, 1]} : vector<1x104xf32> to vector<1x96xf32>
    %cst_11 = arith.constant dense<0xFF800000> : vector<1xf32>
    %13 = vector.multi_reduction <maximumf>, %11, %cst_11 [1] : vector<1x8xf32> to vector<1xf32>
    %14 = vector.shape_cast %13 : vector<1xf32> to vector<1x1xf32>
    %15 = vector.broadcast %14 : vector<1x1xf32> to vector<1x8xf32>
    %16 = arith.subf %11, %15 : vector<1x8xf32>
    %17 = math.exp %16 : vector<1x8xf32>
    %cst_12 = arith.constant dense<0.000000e+00> : vector<1xf32>
    %18 = vector.multi_reduction <add>, %17, %cst_12 [1] : vector<1x8xf32> to vector<1xf32>
    %19 = vector.shape_cast %18 : vector<1xf32> to vector<1x1xf32>
    %20 = vector.broadcast %19 : vector<1x1xf32> to vector<1x8xf32>
    %21 = arith.divf %17, %20 : vector<1x8xf32>
    %c0_13 = arith.constant 0 : index
    %c0_14 = arith.constant 0 : index
    %22 = vector.load %arg4[%c0_13, %c0_14] : memref<8x32xf32, #tpu.memory_space<vmem>>, vector<8x32xf32>
    %cst_15 = arith.constant dense<0.000000e+00> : vector<1x32xf32>
    %23 = tpu.matmul %21, %22, %cst_15 {dimension_numbers = #tpu.dot_dimension_numbers<[1], [0], [0], [1], [0, 0, 1, 1], [], []>} : vector<1x8xf32>, vector<8x32xf32>, vector<1x32xf32> -> vector<1x32xf32>
    %c1 = arith.constant 1 : index
    %c0_16 = arith.constant 0 : index
    %24 = vector.load %arg10[%c1, %c0_16] : memref<4x128xf32, #tpu.memory_space<vmem>>, vector<1x128xf32>
    %c0_17 = arith.constant 0 : index
    %c0_18 = arith.constant 0 : index
    %25 = vector.load %arg7[%c0_17, %c0_18] : memref<64x32xf32, #tpu.memory_space<vmem>>, vector<32x32xf32>
    %cst_19 = arith.constant dense<0.000000e+00> : vector<1x32xf32>
    %26 = tpu.matmul %1, %25, %cst_19 {dimension_numbers = #tpu.dot_dimension_numbers<[1], [0], [0], [1], [0, 0, 1, 1], [], []>} : vector<1x32xf32>, vector<32x32xf32>, vector<1x32xf32> -> vector<1x32xf32>
    %c32 = arith.constant 32 : index
    %c0_20 = arith.constant 0 : index
    %27 = vector.load %arg7[%c32, %c0_20] : memref<64x32xf32, #tpu.memory_space<vmem>>, vector<32x32xf32>
    %cst_21 = arith.constant dense<0.000000e+00> : vector<1x32xf32>
    %28 = tpu.matmul %23, %27, %cst_21 {dimension_numbers = #tpu.dot_dimension_numbers<[1], [0], [0], [1], [0, 0, 1, 1], [], []>} : vector<1x32xf32>, vector<32x32xf32>, vector<1x32xf32> -> vector<1x32xf32>
    %29 = arith.addf %26, %28 : vector<1x32xf32>
    %30 = vector.extract_strided_slice %24 {offsets = [0, 0], sizes = [1, 32], strides = [1, 1]} : vector<1x128xf32> to vector<1x32xf32>
    %31 = arith.addf %29, %30 : vector<1x32xf32>
    %cst_22 = arith.constant 0.000000e+00 : f32
    %32 = vector.broadcast %cst_22 : f32 to vector<1x32xf32>
    %33 = arith.maximumf %31, %32 : vector<1x32xf32>
    %c2 = arith.constant 2 : index
    %c0_23 = arith.constant 0 : index
    %34 = vector.load %arg10[%c2, %c0_23] : memref<4x128xf32, #tpu.memory_space<vmem>>, vector<1x128xf32>
    %c0_24 = arith.constant 0 : index
    %c0_25 = arith.constant 0 : index
    %35 = vector.load %arg8[%c0_24, %c0_25] : memref<32x96xf32, #tpu.memory_space<vmem>>, vector<32x96xf32>
    %cst_26 = arith.constant dense<0.000000e+00> : vector<1x96xf32>
    %36 = tpu.matmul %33, %35, %cst_26 {dimension_numbers = #tpu.dot_dimension_numbers<[1], [0], [0], [1], [0, 0, 1, 1], [], []>} : vector<1x32xf32>, vector<32x96xf32>, vector<1x96xf32> -> vector<1x96xf32>
    %37 = vector.extract_strided_slice %34 {offsets = [0, 0], sizes = [1, 96], strides = [1, 1]} : vector<1x128xf32> to vector<1x96xf32>
    %38 = arith.addf %36, %37 : vector<1x96xf32>
    %39 = vector.extract_strided_slice %38 {offsets = [0, 0], sizes = [1, 32], strides = [1, 1]} : vector<1x96xf32> to vector<1x32xf32>
    %40 = vector.extract_strided_slice %12 {offsets = [0, 0], sizes = [1, 32], strides = [1, 1]} : vector<1x96xf32> to vector<1x32xf32>
    %41 = arith.addf %39, %40 : vector<1x32xf32>
    %42 = arith.negf %41 : vector<1x32xf32>
    %43 = math.exp %42 : vector<1x32xf32>
    %cst_27 = arith.constant 1.000000e+00 : f32
    %44 = vector.broadcast %cst_27 : f32 to vector<1x32xf32>
    %45 = arith.addf %44, %43 : vector<1x32xf32>
    %46 = arith.divf %44, %45 : vector<1x32xf32>
    %47 = vector.extract_strided_slice %38 {offsets = [0, 32], sizes = [1, 32], strides = [1, 1]} : vector<1x96xf32> to vector<1x32xf32>
    %48 = vector.extract_strided_slice %12 {offsets = [0, 32], sizes = [1, 32], strides = [1, 1]} : vector<1x96xf32> to vector<1x32xf32>
    %49 = arith.addf %47, %48 : vector<1x32xf32>
    %50 = arith.negf %49 : vector<1x32xf32>
    %51 = math.exp %50 : vector<1x32xf32>
    %cst_28 = arith.constant 1.000000e+00 : f32
    %52 = vector.broadcast %cst_28 : f32 to vector<1x32xf32>
    %53 = arith.addf %52, %51 : vector<1x32xf32>
    %54 = arith.divf %52, %53 : vector<1x32xf32>
    %55 = vector.extract_strided_slice %38 {offsets = [0, 64], sizes = [1, 32], strides = [1, 1]} : vector<1x96xf32> to vector<1x32xf32>
    %56 = vector.extract_strided_slice %12 {offsets = [0, 64], sizes = [1, 32], strides = [1, 1]} : vector<1x96xf32> to vector<1x32xf32>
    %57 = arith.mulf %46, %56 : vector<1x32xf32>
    %58 = arith.addf %55, %57 : vector<1x32xf32>
    %59 = math.tanh %58 : vector<1x32xf32>
    %cst_29 = arith.constant 1.000000e+00 : f32
    %60 = vector.broadcast %cst_29 : f32 to vector<1x32xf32>
    %61 = arith.subf %60, %54 : vector<1x32xf32>
    %62 = arith.mulf %61, %59 : vector<1x32xf32>
    %63 = arith.mulf %54, %2 : vector<1x32xf32>
    %64 = arith.addf %62, %63 : vector<1x32xf32>
    %c3 = arith.constant 3 : index
    %c0_30 = arith.constant 0 : index
    %65 = vector.load %arg10[%c3, %c0_30] : memref<4x128xf32, #tpu.memory_space<vmem>>, vector<1x128xf32>
    %c0_31 = arith.constant 0 : index
    %c0_32 = arith.constant 0 : index
    %66 = vector.load %arg9[%c0_31, %c0_32] : memref<32x64xf32, #tpu.memory_space<vmem>>, vector<32x64xf32>
    %cst_33 = arith.constant dense<0.000000e+00> : vector<1x64xf32>
    %67 = tpu.matmul %64, %66, %cst_33 {dimension_numbers = #tpu.dot_dimension_numbers<[1], [0], [0], [1], [0, 0, 1, 1], [], []>} : vector<1x32xf32>, vector<32x64xf32>, vector<1x64xf32> -> vector<1x64xf32>
    %68 = vector.extract_strided_slice %65 {offsets = [0, 0], sizes = [1, 64], strides = [1, 1]} : vector<1x128xf32> to vector<1x64xf32>
    %69 = arith.addf %67, %68 : vector<1x64xf32>
    %cst_34 = arith.constant dense<0xFF800000> : vector<1xf32>
    %70 = vector.multi_reduction <maximumf>, %69, %cst_34 [1] : vector<1x64xf32> to vector<1xf32>
    %71 = vector.shape_cast %70 : vector<1xf32> to vector<1x1xf32>
    %72 = vector.broadcast %71 : vector<1x1xf32> to vector<1x64xf32>
    %73 = arith.subf %69, %72 : vector<1x64xf32>
    %74 = math.exp %73 : vector<1x64xf32>
    %cst_35 = arith.constant dense<0.000000e+00> : vector<1xf32>
    %75 = vector.multi_reduction <add>, %74, %cst_35 [1] : vector<1x64xf32> to vector<1xf32>
    %76 = vector.shape_cast %75 : vector<1xf32> to vector<1x1xf32>
    %77 = math.log %76 : vector<1x1xf32>
    %78 = vector.broadcast %77 : vector<1x1xf32> to vector<1x64xf32>
    %79 = arith.subf %73, %78 : vector<1x64xf32>
    %cst_36 = arith.constant 0.000000e+00 : f32
    %80 = vector.broadcast %cst_36 : f32 to vector<1x24xf32>
    %81 = tpu.concatenate %79, %64, %21, %80 in 1 : vector<1x64xf32>, vector<1x32xf32>, vector<1x8xf32>, vector<1x24xf32> -> vector<1x128xf32>
    %c0_37 = arith.constant 0 : index
    %c0_38 = arith.constant 0 : index
    %82 = vector.load %arg11[%c0_37, %c0_38] : memref<1x128xf32, #tpu.memory_space<vmem>>, vector<1x128xf32>
    tpu.vector_store %arg11[%c0_37, %c0_38], %81 {strides = array<i32>} : memref<1x128xf32, #tpu.memory_space<vmem>>, vector<1x128xf32>,
    return
  }
  func.func @transform_0(%arg0: i32, %arg1: memref<1xi32, #tpu.memory_space<smem>>) -> (i32, i32, i32) {
    %c0 = arith.constant 0 : index
    %0 = memref.load %arg1[%c0] : memref<1xi32, #tpu.memory_space<smem>>
    %c0_i32 = arith.constant 0 : i32
    %c0_i32_0 = arith.constant 0 : i32
    %c0_i32_1 = arith.constant 0 : i32
    return %0, %c0_i32, %c0_i32_0 : i32, i32, i32
  }
  func.func @transform_1(%arg0: i32, %arg1: memref<1xi32, #tpu.memory_space<smem>>) -> (i32, i32) {
    %c0_i32 = arith.constant 0 : i32
    %c0_i32_0 = arith.constant 0 : i32
    %c0_i32_1 = arith.constant 0 : i32
    return %c0_i32, %c0_i32_0 : i32, i32
  }
  func.func @transform_2(%arg0: i32, %arg1: memref<1xi32, #tpu.memory_space<smem>>) -> (i32, i32) {
    %c0_i32 = arith.constant 0 : i32
    %c0_i32_0 = arith.constant 0 : i32
    %c0_i32_1 = arith.constant 0 : i32
    return %c0_i32, %c0_i32_0 : i32, i32
  }
  func.func @transform_3(%arg0: i32, %arg1: memref<1xi32, #tpu.memory_space<smem>>) -> (i32, i32) {
    %c0_i32 = arith.constant 0 : i32
    %c0_i32_0 = arith.constant 0 : i32
    %c0_i32_1 = arith.constant 0 : i32
    return %c0_i32, %c0_i32_0 : i32, i32
  }
  func.func @transform_4(%arg0: i32, %arg1: memref<1xi32, #tpu.memory_space<smem>>) -> (i32, i32) {
    %c0_i32 = arith.constant 0 : i32
    %c0_i32_0 = arith.constant 0 : i32
    %c0_i32_1 = arith.constant 0 : i32
    return %c0_i32, %c0_i32_0 : i32, i32
  }
  func.func @transform_5(%arg0: i32, %arg1: memref<1xi32, #tpu.memory_space<smem>>) -> (i32, i32) {
    %c0_i32 = arith.constant 0 : i32
    %c0_i32_0 = arith.constant 0 : i32
    %c0_i32_1 = arith.constant 0 : i32
    return %c0_i32, %c0_i32_0 : i32, i32
  }
  func.func @transform_6(%arg0: i32, %arg1: memref<1xi32, #tpu.memory_space<smem>>) -> (i32, i32) {
    %c0_i32 = arith.constant 0 : i32
    %c0_i32_0 = arith.constant 0 : i32
    %c0_i32_1 = arith.constant 0 : i32
    return %c0_i32, %c0_i32_0 : i32, i32
  }
  func.func @transform_7(%arg0: i32, %arg1: memref<1xi32, #tpu.memory_space<smem>>) -> (i32, i32) {
    %c0_i32 = arith.constant 0 : i32
    %c0_i32_0 = arith.constant 0 : i32
    %c0_i32_1 = arith.constant 0 : i32
    return %c0_i32, %c0_i32_0 : i32, i32
  }
  func.func @transform_8(%arg0: i32, %arg1: memref<1xi32, #tpu.memory_space<smem>>) -> (i32, i32) {
    %c0_i32 = arith.constant 0 : i32
    %c0_i32_0 = arith.constant 0 : i32
    %c0_i32_1 = arith.constant 0 : i32
    return %c0_i32, %c0_i32_0 : i32, i32
  }
  func.func @transform_9(%arg0: i32, %arg1: memref<1xi32, #tpu.memory_space<smem>>) -> (i32, i32) {
    %c0_i32 = arith.constant 0 : i32
    %c0_i32_0 = arith.constant 0 : i32
    %c0_i32_1 = arith.constant 0 : i32
    return %c0_i32, %c0_i32_0 : i32, i32
  }
}

</mosaic_0001>

<bundles_post_ra>
// kernel: attn_decoder_forward.1
= control target key start
LH: loop header
LB: loop body
LE: loop exit
PB: predicated region body
PF: predicated region fallthrough
CT: control target
= control target key end

     0   :  { %v807_v0 = vmov 0.0   ;;  %vm59_vm0 = vcmask 261120   ;;  %vm808_vm1 = vmmov 0   ;;  %vm207_vm2 = vcmask 57344   ;;  %s812_s25 = smov 96   ;;  %s813_s28 = smov 32   ;;  %s1031_s5 = inlined_call_operand.vmem [shape: f32[32,104], index: 5, kind: input, shape index: {}]   ;;  %s1032_s4 = inlined_call_operand.vmem [shape: f32[32,104], index: 4, kind: input, shape index: {}]   ;;  %s1033_s0 = inlined_call_operand.<no memory space> [shape: s32[1], index: 0, kind: input, shape index: {}]   ;;  %s1034_s1 = inlined_call_operand.vmem [shape: f32[64,1,32], index: 1, kind: input, shape index: {}]   ;;  %s1035_s2 = inlined_call_operand.vmem [shape: f32[1,32], index: 2, kind: input, shape index: {}]   ;;  %s1036_s9 = inlined_call_operand.vmem [shape: f32[4,128], index: 9, kind: input, shape index: {}]   ;;  %s1037_s3 = inlined_call_operand.vmem [shape: f32[8,32], index: 3, kind: input, shape index: {}]   ;;  %s1038_s6 = inlined_call_operand.vmem [shape: f32[64,32], index: 6, kind: input, shape index: {}]   ;;  %s1039_s7 = inlined_call_operand.vmem [shape: f32[32,96], index: 7, kind: input, shape index: {}]   ;;  %s1040_s8 = inlined_call_operand.vmem [shape: f32[32,64], index: 8, kind: input, shape index: {}]   ;;  %s1041_s10 = inlined_call_operand.vmem [shape: f32[1,128], index: 10, kind: output, shape index: {}]  }
   0x1   :  { %715 = vmatprep.subr.mxu0 %v807_v0  ;;  %726 = vmatprep.subr.mxu1 %v807_v0  ;;  %v58_v1 = vld [vmem:[%s1031_s5 + $0x18] sm:$0xff]  ;;  %v57_v3 = vld [vmem:[%s1031_s5 + $0x10] sm:$0xff]  ;;  %p44_p0 = scmp.lt.s32.totalorder %s1033_s0, 63  ;;  %v56_v5 = vld [vmem:[%s1031_s5 + $0x8] sm:$0xff]  ;;  %vm220_vm3 = vcmask 64512   ;;  %vm642_vm4 = vcmask 516096  }
   0x2   :  { %v54_v2 = vld [vmem:[%s1032_s4 + $0x18] sm:$0xff]  ;;  %716 = vmatpush3.msra.mxu0 %v58_v1  ;;  %v53_v4 = vld [vmem:[%s1032_s4 + $0x10] sm:$0xff]  ;;  %v52_v6 = vld [vmem:[%s1032_s4 + $0x8] sm:$0xff]  ;;  %723 = vmatprep.mubr.msk.f32.mxu0 %vm808_vm1, %v807_v0  ;;  %v553_v1 = vlaneseq  ;;  %vm661_vm5 = vcmask 523264   ;;  %vm663_vm6 = vcmask 785408   ;;  %vm665_vm7 = vcmask 850944  }
   0x3   :  { %727 = vmatpush3.msra.mxu1 %v54_v2  ;;  %717 = vmatprep.subr.mxu0 %v807_v0  ;;  %s1043_s0 = smov (!%p44_p0, %s1033_s0), 63  ;;  %v55_v7 = vld [vmem:[%s1031_s5] sm:$0xff]  ;;  %v302_v25 = vld [vmem:[%s1038_s6 + $0x38] sm:$0xff]  ;;  %v301_v26 = vld [vmem:[%s1038_s6 + $0x30] sm:$0xff] }
   0x4   :  { %728 = vmatprep.subr.mxu1 %v807_v0  ;;  %718 = vmatpush3.msra.mxu0 %v57_v3  ;;  %s46_s13 = scalar_lea.vmem %s1034_s1, %s1043_s0  ;;  %v51_v8 = vld [vmem:[%s1032_s4] sm:$0xff]  ;;  %s810_s4 = smov 56   ;;  %v300_v27 = vld [vmem:[%s1038_s6 + $0x28] sm:$0xff]  ;;  %v298_v31 = vld [vmem:[%s1038_s6 + $0x18] sm:$0xff]  ;;  %v554_v2 = vshrl.u32 %v553_v1, 7 }
   0x5   :  { %729 = vmatpush3.msra.mxu1 %v53_v4  ;;  %719 = vmatprep.subr.mxu0 %v807_v0  ;;  %v913_v9 = vld [vmem:[%s1035_s2] sm:$0x1]  ;;  %s809_s2 = smov 120   ;;  %v297_v32 = vld [vmem:[%s1038_s6 + $0x10] sm:$0xff]  ;;  %v296_v33 = vld [vmem:[%s1038_s6 + $0x8] sm:$0xff] }
   0x6   :  { %730 = vmatprep.subr.mxu1 %v807_v0  ;;  %720 = vmatpush3.msra.mxu0 %v56_v5  ;;  %v915_v10 = vld [vmem:[%s46_s13] sm:$0x1]  ;;  %v452_v40 = vld [vmem:[%s1039_s7 + $0x18] sm:$0xff]  ;;  %v451_v41 = vld [vmem:[%s1039_s7 + $0x10] sm:$0xff]  ;;  %v555_v3 = vsub.s32 0, %v554_v2 }
   0x7   :  { %731 = vmatpush3.msra.mxu1 %v52_v6  ;;  %721 = vmatprep.subr.mxu0 %v807_v0  ;;  %v50_v12 = vld [vmem:[%s1036_s9] sm:$0x1]  ;;  %v450_v42 = vld [vmem:[%s1039_s7 + $0x8] sm:$0xff]  ;;  %v294_v44 = vld [vmem:[%s1036_s9 + $0x1] sm:$0x1] }
   0x8   :  { %732 = vmatprep.subr.mxu1 %v807_v0  ;;  %722 = vmatpush3.msra.mxu0 %v55_v7  ;;  %v219_v24 = vld [vmem:[%s1037_s3] sm:$0xff]  ;;  %v566_v4 = vld [vmem:[%s1040_s8 + $0x18] sm:$0xff]  ;;  %v565_v5 = vld [vmem:[%s1040_s8 + $0x10] sm:$0xff] }
   0x9   :  { %733 = vmatpush3.msra.mxu1 %v51_v8  ;;  %734 = vmatprep.mubr.msk.f32.mxu1 %vm808_vm1, %v807_v0  ;;  %v295_v34 = vld [vmem:[%s1038_s6] sm:$0xff]  ;;  %v564_v6 = vld [vmem:[%s1040_s8 + $0x8] sm:$0xff]  ;;  %v556_v8 = vrot.slane %v913_v9, %v555_v3 }
   0xa   :  { %724 = vmatmul.mubr.msk.f32.vlgmr.msra.gmra.mxu0 %vm59_vm0, %v913_v9  ;;  %735 = vmatmul.mubr.msk.f32.vlgmr.msra.gmra.mxu1 %vm59_vm0, %v915_v10  ;;  %v299_v35 = vld [vmem:[%s1038_s6 + $0x20] sm:$0xff] }
   0xb   :  { %737 = vmatprep.subr.mxu0 %v807_v0  ;;  %739 = vmatprep.mubr.msk.f32.mxu0 %vm808_vm1, %v807_v0  ;;  %v449_v43 = vld [vmem:[%s1039_s7] sm:$0xff]  ;;  %s811_s7 = smov 64  }
   0xc   :  { %742 = vmatprep.subr.mxu1 %v807_v0  ;;  %750 = vmatprep.mubr.msk.f32.mxu1 %vm808_vm1, %v807_v0  ;;  %v448_v50 = vld [vmem:[%s1036_s9 + $0x2] sm:$0x1] }
   0xd   :  { %738 = vmatpush3.msra.mxu0 %v219_v24  ;;  %743 = vmatpush3.msra.mxu1 %v302_v25 }
   0xe   :  { %753 = vmatprep.subr.mxu0 %v807_v0  ;;  %744 = vmatprep.subr.mxu1 %v807_v0 }
   0xf   :  { %745 = vmatpush3.msra.mxu1 %v301_v26 }
  0x10   :  { %746 = vmatprep.subr.mxu1 %v807_v0 }
  0x11   :  { %747 = vmatpush3.msra.mxu1 %v300_v27 }
  0x12   :  { %748 = vmatprep.subr.mxu1 %v807_v0 }
  0x13   :  { %749 = vmatpush3.msra.mxu1 %v299_v35 }
  0x14   :  { %764 = vmatprep.subr.mxu1 %v807_v0 }
  0xca   :  { %v129_v11 = vpop.f32.mrf.mxu0  ;;  %v202_v13 = vpop.f32.mrf.mxu1 }
  0xcb   :  { %v203_v14 = vadd.f32 %v202_v13, %v129_v11 }
  0xcc   :  { %v725_v15 = vpop.f32.mrf.mxu0  ;;  %v736_v16 = vpop.f32.mrf.mxu1 }
  0xcd   :  { %v206_v17 = vadd.f32 %v203_v14, %v50_v12 }
  0xcf   :  { %527 = vrot.lane.b32.xlu1 %v206_v17, %s809_s2  ;;  %v208_v18 = vsel %vm207_vm2, %v206_v17, -inf }
  0xd0   :  { %209 = vmax.xlane.f32.xlu0 %v208_v18 }
  0xd3   :  { %537 = vrot.lane.b32.xlu1 %v206_v17, %s810_s4 }
 0x141   :  { %v528_v53 = vpop.permute.xlu1 %527 }
 0x145   :  { %v538_v60 = vpop.permute.xlu1 %537 }
 0x159   :  { %v210_v19 = vpop.xlane.xlu0 %209 }
 0x15a   :  { %v211_v20 = vsub.f32 %v206_v17, %v210_v19  ;;  %v562_v17 = vld [vmem:[%s1036_s9 + $0x3] sm:$0x1] }
 0x15c   :  { %v212_v21 = vmul.f32 1.442695, %v211_v20 }
 0x15e   :  { %793 = vpow2.f32 %v212_v21 }
 0x16b   :  { %v794_v22 = vpop.eup %793 }
 0x16c   :  { %v214_v23 = vsel %vm207_vm2, %v794_v22, 0.0 }
 0x16d   :  { %215 = vadd.xlane.f32.xlu0 %v214_v23 }
 0x1f6   :  { %v216_v28 = vpop.xlane.xlu0 %215 }
 0x1f7   :  { %795 = vrcp.f32 %v216_v28 }
 0x204   :  { %v796_v29 = vpop.eup %795 }
 0x205   :  { %v950_v30 = vmul.f32 %v796_v29, %v794_v22 }
 0x207   :  { %740 = vmatmul.mubr.msk.f32.vlgmr.msra.gmra.mxu0 %vm220_vm3, %v950_v30 }
 0x208   :  { %754 = vmatpush3.msra.mxu0 %v298_v31  ;;  %761 = vmatprep.mubr.msk.f32.mxu0 %vm808_vm1, %v807_v0 }
 0x209   :  { %755 = vmatprep.subr.mxu0 %v807_v0 }
 0x20a   :  { %756 = vmatpush3.msra.mxu0 %v297_v32 }
 0x20b   :  { %757 = vmatprep.subr.mxu0 %v807_v0 }
 0x20c   :  { %758 = vmatpush3.msra.mxu0 %v296_v33 }
 0x20d   :  { %759 = vmatprep.subr.mxu0 %v807_v0 }
 0x20e   :  { %760 = vmatpush3.msra.mxu0 %v295_v34 }
 0x20f   :  { %762 = vmatmul.mubr.msk.f32.vlgmr.msra.gmra.mxu0 %vm59_vm0, %v915_v10  ;;  %775 = vmatprep.subr.mxu0 %v807_v0  ;;  %v563_v10 = vld [vmem:[%s1040_s8] sm:$0xff] }
 0x210   :  { %783 = vmatprep.mubr.msk.f32.mxu0 %vm808_vm1, %v807_v0  ;;  %776 = vmatpush3.msra.mxu0 %v566_v4 }
 0x211   :  { %777 = vmatprep.subr.mxu0 %v807_v0 }
 0x212   :  { %778 = vmatpush3.msra.mxu0 %v565_v5 }
 0x213   :  { %779 = vmatprep.subr.mxu0 %v807_v0 }
 0x214   :  { %780 = vmatpush3.msra.mxu0 %v564_v6 }
 0x215   :  { %781 = vmatprep.subr.mxu0 %v807_v0 }
 0x216   :  { %782 = vmatpush3.msra.mxu0 %v563_v10 }
 0x2c7   :  { %v290_v36 = vpop.f32.mrf.mxu0 }
 0x2c8   :  { %751 = vmatmul.mubr.msk.f32.vlgmr.msra.gmra.mxu1 %vm59_vm0, %v290_v36 }
 0x2c9   :  { %v741_v37 = vpop.f32.mrf.mxu0  ;;  %772 = vmatprep.mubr.msk.f32.mxu1 %vm808_vm1, %v807_v0  ;;  %765 = vmatpush3.msra.mxu1 %v452_v40 }
 0x2ca   :  { %766 = vmatprep.subr.mxu1 %v807_v0 }
 0x2cb   :  { %767 = vmatpush3.msra.mxu1 %v451_v41 }
 0x2cc   :  { %768 = vmatprep.subr.mxu1 %v807_v0 }
 0x2cd   :  { %769 = vmatpush3.msra.mxu1 %v450_v42 }
 0x2ce   :  { %770 = vmatprep.subr.mxu1 %v807_v0 }
 0x2cf   :  { %v442_v38 = vpop.f32.mrf.mxu0  ;;  %771 = vmatpush3.msra.mxu1 %v449_v43 }
 0x2d1   :  { %v763_v39 = vpop.f32.mrf.mxu0 }
 0x388   :  { %v372_v45 = vpop.f32.mrf.mxu1 }
 0x389   :  { %v443_v46 = vadd.f32 %v442_v38, %v372_v45 }
 0x38a   :  { %v752_v47 = vpop.f32.mrf.mxu1 }
 0x38b   :  { %v446_v48 = vadd.f32 %v443_v46, %v294_v44 }
 0x38d   :  { %v447_v49 = vmax.f32 %v446_v48, 0.0 }
 0x38f   :  { %773 = vmatmul.mubr.msk.f32.vlgmr.msra.gmra.mxu1 %vm59_vm0, %v447_v49 }
 0x44f   :  { %v522_v51 = vpop.f32.mrf.mxu1 }
 0x450   :  { %v523_v52 = vadd.f32 %v522_v51, %v448_v50 }
 0x451   :  { %v774_v54 = vpop.f32.mrf.mxu1 }
 0x452   :  { %v530_v55 = vadd.f32 %v528_v53, %v523_v52 }
 0x454   :  { %v681_v56 = vmul.f32 -1.442695, %v530_v55 }
 0x456   :  { %797 = vpow2.f32 %v681_v56 }
 0x463   :  { %v798_v57 = vpop.eup %797 }
 0x464   :  { %v534_v58 = vadd.f32 1.0, %v798_v57 }
 0x466   :  { %799 = vrcp.f32 %v534_v58 }
 0x473   :  { %v800_v59 = vpop.eup %799 }
 0x474   :  { %v540_v61 = vmul.f32 %v800_v59, %v538_v60  ;;  %v547_v12 = vsub.f32 1.0, %v800_v59 }
 0x476   :  { %542 = vrot.lane.b32.xlu0 %v540_v61, %s811_s7 }
 0x4e8   :  { %v543_v62 = vpop.permute.xlu0 %542 }
 0x4e9   :  { %v545_v63 = vadd.f32 %v543_v62, %v523_v52 }
 0x4eb   :  { %801 = vtanh.f32 %v545_v63 }
 0x4f8   :  { %v802_v7 = vpop.eup %801 }
 0x4f9   :  { %549 = vrot.lane.b32.xlu1 %v802_v7, %s812_s25 }
 0x4fd   :  { %557 = vrot.lane.b32.xlu1 %v556_v8, %s813_s28 }
 0x56b   :  { %v550_v11 = vpop.permute.xlu1 %549 }
 0x56c   :  { %v552_v14 = vmul.f32 %v550_v11, %v547_v12 }
 0x56f   :  { %v558_v13 = vpop.permute.xlu1 %557 }
 0x570   :  { %v560_v15 = vmul.f32 %v800_v59, %v558_v13 }
 0x572   :  { %v561_v16 = vadd.f32 %v560_v15, %v552_v14 }
 0x574   :  { %568 = vrot.lane.b32.xlu1 %v561_v16, %s812_s25 }
 0x5e6   :  { %v569_v9 = vpop.permute.xlu1 %568 }
 0x5e7   :  { %784 = vmatmul.mubr.msk.f32.vlgmr.msra.gmra.mxu0 %vm59_vm0, %v569_v9 }
 0x6a7   :  { %v638_v18 = vpop.f32.mrf.mxu0 }
 0x6a8   :  { %v639_v0 = vadd.f32 %v638_v18, %v562_v17 }
 0x6a9   :  { %v785_v19 = vpop.f32.mrf.mxu0 }
 0x6aa   :  { %v643_v20 = vsel %vm642_vm4, %v639_v0, -inf }
 0x6ab   :  { %644 = vmax.xlane.f32.xlu1 %v643_v20 }
 0x6bc   :  { %655 = vrot.lane.b32.xlu1 %v561_v16, %s813_s28 }
 0x734   :  { %v645_v21 = vpop.xlane.xlu1 %644 }
 0x735   :  { %v646_v22 = vsub.f32 %v639_v0, %v645_v21 }
 0x737   :  { %v647_v23 = vmul.f32 1.442695, %v646_v22 }
 0x738   :  { %v656_v31 = vpop.permute.xlu1 %655 }
 0x739   :  { %803 = vpow2.f32 %v647_v23 }
 0x746   :  { %v804_v24 = vpop.eup %803 }
 0x747   :  { %v649_v25 = vsel %vm642_vm4, %v804_v24, 0.0 }
 0x748   :  { %650 = vadd.xlane.f32.xlu0 %v649_v25 }
 0x75e   :  { %658 = vrot.lane.b32.xlu0 %v950_v30, %s812_s25 }
 0x7d1   :  { %v651_v26 = vpop.xlane.xlu0 %650 }
 0x7d2   :  { %805 = vlog2.f32 %v651_v26 }
 0x7d5   :  { %v659_v32 = vpop.permute.xlu0 %658 }
 0x7df   :  { %v806_v27 = vpop.eup %805 }
 0x7e0   :  { %v653_v28 = vmul.f32 0.6931472, %v806_v27 }
 0x7e2   :  { %v654_v29 = vsub.f32 %v646_v22, %v653_v28 }
 0x7e4   :  { %v662_v33 = vsel %vm661_vm5, %v654_v29, %v656_v31 }
 0x7e5   :  { %v664_v34 = vsel %vm663_vm6, %v662_v33, %v659_v32 }
 0x7e6   :  { %v666_v35 = vsel %vm665_vm7, %v664_v34, 0.0 }
 0x7e7   :  { %667 = vst [vmem:[%s1041_s10] sm:$0x1] %v666_v35 }

</bundles_post_ra>
